<compile_context>
chip_gen: v6e
topology: v6e:2x2x1
jax: 0.10.0
libtpu: 0.0.40
codegen_flags: <defaults>
</compile_context>

<pallas_src>
import functools

import jax
import jax.numpy as jnp
from jax.experimental import pallas as pl
from jax.experimental.pallas import tpu as pltpu

_LANES = 128
_SUBLANES = 8
_MAX_TILE_ROWS = 2048   # (2048, 128) f32 = 1 MiB per input block
_NUM_SPLITS = 2         # leading "parallel" axis (2 TCs on v7x; harmless elsewhere)


def _rmse_kernel(p_ref, t_ref, o_ref, *, n_true, tile_rows, inner_tiles):
    c = pl.program_id(0)   # core-split index ("parallel")
    i = pl.program_id(1)   # tile index within this split (reduction axis)

    # Output block (8,128) stays resident across the inner axis -> accumulator.
    @pl.when(i == 0)
    def _():
        o_ref[...] = jnp.zeros_like(o_ref)

    d = p_ref[...].astype(jnp.float32) - t_ref[...].astype(jnp.float32)

    # Mask out-of-range elements (tail tile, lane padding, or the clamped
    # redundant tile on the second split) by global element index.
    # int32 index math is valid for inputs up to ~2**31 elements.
    tile_idx = c * inner_tiles + i
    row_ids = jax.lax.broadcasted_iota(jnp.int32, (tile_rows, _LANES), 0)
    lane_ids = jax.lax.broadcasted_iota(jnp.int32, (tile_rows, _LANES), 1)
    global_idx = (tile_idx * tile_rows + row_ids) * _LANES + lane_ids
    d = jnp.where(global_idx < n_true, d, jnp.float32(0.0))

    sq = d * d
    # Fold the (tile_rows, 128) tile into the (8, 128) accumulator.  The
    # reshape is layout-preserving (each group of 8 rows is one f32 vreg) and
    # the leading-axis sum is pure elementwise vreg adds on the VPU.
    o_ref[...] += sq.reshape(tile_rows // _SUBLANES, _SUBLANES, _LANES).sum(axis=0)


def rmse(pred, target):
    """sqrt(mean((pred - target)^2)) over all elements, like nn.MSELoss + sqrt."""
    assert pred.shape == target.shape, "pred/target must have the same shape"
    n_true = pred.size

    p = pred.reshape(-1)
    t = target.reshape(-1)

    # Pad only to a multiple of 128 lanes when strictly required for the 2-D
    # view; padded elements are masked inside the kernel.
    pad = (-n_true) % _LANES
    if pad:
        p = jnp.pad(p, (0, pad))
        t = jnp.pad(t, (0, pad))

    rows = p.size // _LANES
    p2 = p.reshape(rows, _LANES)
    t2 = t.reshape(rows, _LANES)

    # Row tile: as large as _MAX_TILE_ROWS but never (much) larger than the
    # slab itself; always a multiple of 8 sublanes.
    tile_rows = min(_MAX_TILE_ROWS, ((rows + _SUBLANES - 1) // _SUBLANES) * _SUBLANES)
    n_tiles = pl.cdiv(rows, tile_rows)
    inner_tiles = pl.cdiv(n_tiles, _NUM_SPLITS)

    def in_map(c, i):
        idx = c * inner_tiles + i
        # Clamp so the DMA never walks past the array; the redundant (clamped)
        # tile is fully masked out inside the kernel.
        return (jnp.minimum(idx, n_tiles - 1), 0)

    kernel = functools.partial(
        _rmse_kernel, n_true=n_true, tile_rows=tile_rows, inner_tiles=inner_tiles
    )

    partials = pl.pallas_call(
        kernel,
        out_shape=jax.ShapeDtypeStruct((_NUM_SPLITS * _SUBLANES, _LANES), jnp.float32),
        grid_spec=pltpu.PrefetchScalarGridSpec(
            num_scalar_prefetch=0,
            grid=(_NUM_SPLITS, inner_tiles),
            in_specs=[
                pl.BlockSpec((tile_rows, _LANES), in_map),
                pl.BlockSpec((tile_rows, _LANES), in_map),
            ],
            out_specs=pl.BlockSpec((_SUBLANES, _LANES), lambda c, i: (c, 0)),
        ),
        compiler_params=pltpu.CompilerParams(
            dimension_semantics=("parallel", "arbitrary"),
        ),
    )(p2, t2)

    # Tiny final combine (2 * 8 * 128 partial sums) + mean + sqrt in plain JAX.
    return jnp.sqrt(jnp.sum(partials) / jnp.float32(n_true))


if __name__ == "__main__":
    key = jax.random.PRNGKey(0)
    k1, k2 = jax.random.split(key)
    shape = (2, 4, 16, 16)
    pred = jax.random.normal(k1, shape, dtype=jnp.float32)
    target = jax.random.normal(k2, shape, dtype=jnp.float32)

    loss = rmse(pred, target)
    jax.block_until_ready(loss)

    # Reference check (plain JAX)
    ref = jnp.sqrt(jnp.mean((pred - target) ** 2))
    assert jnp.allclose(loss, ref, rtol=1e-5, atol=1e-6), (loss, ref)

    print("KERNEL_OK")
</pallas_src>

<mosaic_0001>
module attributes {stable_mosaic.version = 11 : i64} {
  func.func @_rmse_kernel(%arg0: i32, %arg1: i32, %arg2: memref<16x128xf32, #tpu.memory_space<vmem>>, %arg3: memref<16x128xf32, #tpu.memory_space<vmem>>, %arg4: memref<8x128xf32, #tpu.memory_space<vmem>>) attributes {dimension_semantics = [#tpu.dimension_semantics<parallel>, #tpu.dimension_semantics<arbitrary>], iteration_bounds = array<i64: 2, 1>, scalar_prefetch = 0 : i64, scratch_operands = 0 : i64, tpu.core_type = #tpu.core_type<tc>, window_params = [{transform_indices = @transform_0, window_bounds = array<i64: 16, 128>}, {transform_indices = @transform_1, window_bounds = array<i64: 16, 128>}, {transform_indices = @transform_2, window_bounds = array<i64: 8, 128>}]} {
    %c0_i32 = arith.constant 0 : i32
    %0 = arith.cmpi eq, %arg1, %c0_i32 : i32
    %1 = arith.extui %0 : i1 to i32
    %c0_i32_0 = arith.constant 0 : i32
    %2 = arith.cmpi ne, %1, %c0_i32_0 : i32
    scf.if %2 {
      %cst_9 = arith.constant 0.000000e+00 : f32
      %26 = vector.broadcast %cst_9 : f32 to vector<8x128xf32>
      %c0_10 = arith.constant 0 : index
      %c0_11 = arith.constant 0 : index
      %27 = vector.load %arg4[%c0_10, %c0_11] : memref<8x128xf32, #tpu.memory_space<vmem>>, vector<8x128xf32>
      tpu.vector_store %arg4[%c0_10, %c0_11], %26 {strides = array<i32>} : memref<8x128xf32, #tpu.memory_space<vmem>>, vector<8x128xf32>,
    } else {
    }
    %c0 = arith.constant 0 : index
    %c0_1 = arith.constant 0 : index
    %3 = vector.load %arg2[%c0, %c0_1] : memref<16x128xf32, #tpu.memory_space<vmem>>, vector<16x128xf32>
    %c0_2 = arith.constant 0 : index
    %c0_3 = arith.constant 0 : index
    %4 = vector.load %arg3[%c0_2, %c0_3] : memref<16x128xf32, #tpu.memory_space<vmem>>, vector<16x128xf32>
    %5 = arith.subf %3, %4 : vector<16x128xf32>
    %c1_i32 = arith.constant 1 : i32
    %6 = arith.muli %arg0, %c1_i32 : i32
    %7 = arith.addi %6, %arg1 : i32
    %8 = tpu.iota {dimensions = array<i32: 0>} : vector<16x128xi32>
    %9 = tpu.iota {dimensions = array<i32: 1>} : vector<16x128xi32>
    %c16_i32 = arith.constant 16 : i32
    %10 = arith.muli %7, %c16_i32 : i32
    %11 = vector.broadcast %10 : i32 to vector<16x128xi32>
    %12 = arith.addi %11, %8 : vector<16x128xi32>
    %c128_i32 = arith.constant 128 : i32
    %13 = vector.broadcast %c128_i32 : i32 to vector<16x128xi32>
    %14 = arith.muli %12, %13 : vector<16x128xi32>
    %15 = arith.addi %14, %9 : vector<16x128xi32>
    %c2048_i32 = arith.constant 2048 : i32
    %16 = vector.broadcast %c2048_i32 : i32 to vector<16x128xi32>
    %17 = arith.cmpi slt, %15, %16 : vector<16x128xi32>
    %cst = arith.constant 0.000000e+00 : f32
    %18 = vector.broadcast %cst : f32 to vector<16x128xf32>
    %19 = arith.select %17, %5, %18 : vector<16x128xi1>, vector<16x128xf32>
    %20 = arith.mulf %19, %19 : vector<16x128xf32>
    %c0_4 = arith.constant 0 : index
    %c0_5 = arith.constant 0 : index
    %21 = vector.load %arg4[%c0_4, %c0_5] : memref<8x128xf32, #tpu.memory_space<vmem>>, vector<8x128xf32>
    %22 = vector.shape_cast %20 : vector<16x128xf32> to vector<2x8x128xf32>
    %cst_6 = arith.constant dense<0.000000e+00> : vector<8x128xf32>
    %23 = vector.multi_reduction <add>, %22, %cst_6 [0] : vector<2x8x128xf32> to vector<8x128xf32>
    %24 = arith.addf %21, %23 : vector<8x128xf32>
    %c0_7 = arith.constant 0 : index
    %c0_8 = arith.constant 0 : index
    %25 = vector.load %arg4[%c0_7, %c0_8] : memref<8x128xf32, #tpu.memory_space<vmem>>, vector<8x128xf32>
    tpu.vector_store %arg4[%c0_7, %c0_8], %24 {strides = array<i32>} : memref<8x128xf32, #tpu.memory_space<vmem>>, vector<8x128xf32>,
    return
  }
  func.func @transform_0(%arg0: i32, %arg1: i32) -> (i32, i32) {
    %c1_i32 = arith.constant 1 : i32
    %0 = arith.muli %arg0, %c1_i32 : i32
    %1 = arith.addi %0, %arg1 : i32
    %c0_i32 = arith.constant 0 : i32
    %2 = arith.minsi %1, %c0_i32 : i32
    %c0_i32_0 = arith.constant 0 : i32
    %c0_i32_1 = arith.constant 0 : i32
    return %2, %c0_i32_0 : i32, i32
  }
  func.func @transform_1(%arg0: i32, %arg1: i32) -> (i32, i32) {
    %c1_i32 = arith.constant 1 : i32
    %0 = arith.muli %arg0, %c1_i32 : i32
    %1 = arith.addi %0, %arg1 : i32
    %c0_i32 = arith.constant 0 : i32
    %2 = arith.minsi %1, %c0_i32 : i32
    %c0_i32_0 = arith.constant 0 : i32
    %c0_i32_1 = arith.constant 0 : i32
    return %2, %c0_i32_0 : i32, i32
  }
  func.func @transform_2(%arg0: i32, %arg1: i32) -> (i32, i32) {
    %c0_i32 = arith.constant 0 : i32
    %c0_i32_0 = arith.constant 0 : i32
    return %arg0, %c0_i32 : i32, i32
  }
}

</mosaic_0001>

<bundles_post_ra>
// kernel: tpu_custom_call.1
= control target key start
LH: loop header
LB: loop body
LE: loop exit
PB: predicated region body
PF: predicated region fallthrough
CT: control target
= control target key end

     0   :  { %7 = vsyncpa [#allocation3], 0  ;;  %s867_s0 = inlined_call_operand.hbm [shape: f32[16,128], index: 0, kind: input, shape index: {}]   ;;  %s868_s1 = inlined_call_operand.hbm [shape: f32[16,128], index: 1, kind: input, shape index: {}]   ;;  %s869_s2 = inlined_call_operand.hbm [shape: f32[16,128], index: 2, kind: output, shape index: {}]  }
   0x1   :  { %9 = vsyncpa [#allocation3 + $0x1], 0 }
   0x2   :  { %10 = vsyncpa [#allocation6], 0 }
   0x3   :  { %12 = vsyncpa [#allocation6 + $0x1], 0 }
   0x4   :  { %13 = vsyncpa [#allocation4], 0 }
   0x5   :  { %15 = vsyncpa [#allocation4 + $0x1], 0  ;;  %s688_s9 = smov 0   ;;  %s690_s10 = smov 0  }
   0x6   :  { %s692_s11 = smov 0   ;;  %s694_s12 = smov 0  }
   0x7   :  { %s696_s13 = smov 0   ;;  %s698_s14 = smov 0  }
   0x8   :  { %s700_s15 = smov 0   ;;  %s702_s16 = smov 0  }
   0x9 LB: > { %s390_s17 = sadd.s32 4294967295, %s666_s16   ;;  %s391_s18 = sadd.s32 4294967294, %s666_s16   ;;  %s666_s16 = sphi %s702_s16, %s21_s16   ;;  %s662_s15 = sphi %s700_s15, %s888_s15   ;;  %s658_s14 = sphi %s698_s14, %s887_s14   ;;  %s654_s13 = sphi %s696_s13, %s857_s13   ;;  %s650_s12 = sphi %s694_s12, %s886_s12   ;;  %s646_s11 = sphi %s692_s11, %s885_s11   ;;  %s642_s10 = sphi %s690_s10, %s884_s10   ;;  %s638_s9 = sphi %s688_s9, %s883_s9  }
   0xa   : > { %s33_s19 = sadd.s32 1, %s662_s15  ;;  %p635_p1 = scmp.ne.s32.totalorder %s654_s13, 0 }
   0xb   : > { %p35_p0 = scmp.ge.s32.totalorder %s33_s19, 2  ;;  %p54_p2 = scmp.eq.s32.totalorder %s666_s16, 0 }
   0xc   : > { %p59_p3 = scmp.ne.s32.totalorder %s654_s13, %s650_s12  ;;  %p60_p5 = scmp.eq.s32.totalorder %s390_s17, 0 }
   0xd   : > { %s890_s19 = smov (%p35_p0, %s33_s19), 0  ;;  %p734_p4 = por %p635_p1, %p54_p2 }
   0xe   : > { %p738_p6 = por %p60_p5, %p59_p3  ;;  %s101_s22 = ssub.s32 %s662_s15, %s890_s19 }
   0xf   : > { %p102_p7 = scmp.eq.s32.totalorder %s101_s22, 0  ;;  %s104_s23 = sadd.s32 1, %s646_s11 }
  0x10   : > { %s873_s21 = scalar_select %p738_p6, 1, 0 }
  0x11   : > { %s746_s24 = scalar_select %p102_p7, %s646_s11, %s104_s23  }
  0x12   : > { %p114_p8 = scmp.ne.s32.totalorder %s646_s11, %s642_s10  ;;  %p115_p9 = scmp.eq.s32.totalorder %s390_s17, 1 }
  0x13   : > { %p120_p10 = scmp.ne.s32.totalorder %s642_s10, %s638_s9  ;;  %p121_p11 = scmp.eq.s32.totalorder %s391_s18, 1 }
  0x14   : > { %p752_p12 = por %p115_p9, %p114_p8  ;;  %p428_p1 = scmp.lt.s32.totalorder %s666_s16, 2 }
  0x15   : > { %p757_p0 = por %p121_p11, %p120_p10  ;;  %s668_s27 = smov [#allocation2]  }
  0x16   : > { %s874_s25 = scalar_select %p752_p12, 1, 0 }
  0x17   : > { %s875_s26 = scalar_select %p757_p0, 1, 0 }
  0x18   : > { %s155_s28 = sshll.u32 %s668_s27, 4  ;;  %p764_p2 = pnand %p428_p1, %p734_p4  ;;  %s156_s28 = int_to_ptr.vmem [resolvable:$true] %s155_s28 }
  0x19   : > { %s505_s4 = scalar_lea.hbm %s867_s0, 256 }
  0x1a   : > { %p506_p3 = scmp.ne.s32.totalorder %s867_s0, %s505_s4  ;;  %p507_p5 = pneg %p764_p2 }
  0x1b   : > { %p512_p8 = scmp.lt.s32.totalorder %s505_s4, %s505_s4 }
  0x1c   : > { %p508_p7 = pnand %p507_p5, %p506_p3 }
  0x1e   : > { %p509_p4 = pneg %p508_p7 }
  0x20   : > { %p514_p9 = pnand %p512_p8, %p509_p4 }
  0x22   : > { %517 = shalt.err (!%p514_p9)
}
  0x23   : > { %s518_s7 = scalar_lea.vmem %s156_s28, 256  ;;  %s525_s8 = scalar_lea.vmem %s156_s28, 512 }
  0x24   : > { %p519_p10 = scmp.ne.s32.totalorder %s156_s28, %s518_s7  ;;  %p526_p13 = scmp.lt.s32.totalorder %s156_s28, %s156_s28 }
  0x25   : > { %p527_p0 = scmp.lt.s32.totalorder %s525_s8, %s518_s7 }
  0x26   : > { %p521_p11 = pnand %p519_p10, %p507_p5 }
  0x27   : > { %p528_p12 = por %p527_p0, %p526_p13 }
  0x28   : > { %p522_p1 = pneg %p521_p11 }
  0x2a   : > { %p529_p6 = pnand %p528_p12, %p522_p1 }
  0x2c   : > { %532 = shalt.err (!%p529_p6)
}
  0x2d   : > { %s669_s12 = smov 128   ;;  %s670_s17 = smov 8  }
  0x2e   : > { %420 = dma.hbm_to_vmem [thread:$0]  (!%p764_p2), %s867_s0, 256, %s156_s28, [#allocation3], %s669_s12, %s669_s12, %s670_s17  }
  0x2f   : > { %p400_p3 = scmp.ge.s32.totalorder %s666_s16, 1  ;;  %p187_p7 = scmp.lt.s32.totalorder %s666_s16, 3 }
  0x30   : > { %s671_s23 = smov [#allocation5]   ;;  %s533_s4 = scalar_lea.hbm %s868_s1, 256 }
  0x31   : > { %p789_p4 = pnand %p400_p3, %p187_p7  ;;  %s179_s27 = sshll.u32 %s671_s23, 4  ;;  %s180_s27 = int_to_ptr.vmem [resolvable:$true] %s179_s27 }
  0x32   : > { %p534_p6 = scmp.ne.s32.totalorder %s868_s1, %s533_s4  ;;  %p540_p0 = scmp.lt.s32.totalorder %s533_s4, %s533_s4 }
  0x33   : > { %s877_s22 = scalar_select %p789_p4, 1, 0 }
  0x34   : > { %p536_p12 = pnand %p534_p6, %p507_p5 }
  0x36   : > { %p537_p13 = pneg %p536_p12 }
  0x38   : > { %p542_p8 = pnand %p540_p0, %p537_p13 }
  0x3a   : > { %545 = shalt.err (!%p542_p8)
}
  0x3b   : > { %s546_s28 = scalar_lea.vmem %s180_s27, 256  ;;  %s553_s7 = scalar_lea.vmem %s180_s27, 512 }
  0x3c   : > { %p547_p9 = scmp.ne.s32.totalorder %s180_s27, %s546_s28  ;;  %p554_p1 = scmp.lt.s32.totalorder %s180_s27, %s180_s27 }
  0x3d   : > { %p555_p3 = scmp.lt.s32.totalorder %s553_s7, %s546_s28 }
  0x3e   : > { %p549_p10 = pnand %p547_p9, %p507_p5 }
  0x3f   : > { %p556_p7 = por %p555_p3, %p554_p1 }
  0x40   : > { %p550_p11 = pneg %p549_p10 }
  0x42   : > { %p557_p4 = pnand %p556_p7, %p550_p11 }
  0x44   : > { %560 = shalt.err (!%p557_p4)
}
  0x45   : > { %423 = dma.hbm_to_vmem [thread:$0]  (!%p764_p2), %s868_s1, 256, %s180_s27, [#allocation6], %s669_s12, %s669_s12, %s670_s17  }
  0x46   : > { %p878_p6 = scmp.ne.s32.totalorder %s877_s22, 0 }
  0x47   : > { %s193_s20 = sand.u32 (!%p878_p6), 1, %s654_s13   ;;  %p879_p5 = scmp.ne.s32.totalorder (!%p878_p6), %s873_s21, 0 }
  0x48   : > { %191 = sbr.rel (%p878_p6) target bundleno = 111 (0x6f), region = 28  ;;  %s401_s23 = sshll.u32 (!%p878_p6), %s193_s20, 4 }
  0x49   : > { %s194_s30 = scalar_lea.sflag (!%p878_p6), [#allocation3], %s193_s20  ;;  %s197_s3 = scalar_lea.vmem (!%p878_p6), [#allocation2], %s401_s23 }
  0x4d   : > { %624 = dma.done.wait (%p879_p5), %s194_s30, 256  }
  0x4e   : > { %626 = vsyncadd (%p879_p5), %s194_s30, 4294967040  ;;  %s203_s29 = scalar_lea.sflag [#allocation6], %s193_s20  ;;  %s206_s4 = scalar_lea.vmem [#allocation5], %s401_s23 }
  0x4f   : > { %628 = dma.done.wait (%p879_p5), %s203_s29, 256  }
  0x50   : > { %630 = vsyncadd (%p879_p5), %s203_s29, 4294967040  ;;  %v252_v0 = vlaneseq  ;;  %s404_s12 = sshll.u32 %s658_s14, 4  ;;  %s229_s17 = sand.u32 1, %s642_s10   ;;  %v245_v8 = vld [vmem:[%s197_s3] sm:$0xff]  ;;  %v246_v9 = vld [vmem:[%s197_s3 + $0x8] sm:$0xff] }
  0x51   : > { %v258_v1 = vstv %s404_s12  ;;  %v247_v10 = vld [vmem:[%s206_s4] sm:$0xff]  ;;  %v248_v11 = vld [vmem:[%s206_s4 + $0x8] sm:$0xff]  ;;  %s403_s21 = sshll.u32 %s229_s17, 3  ;;  %s406_s22 = sshll.u32 %s658_s14, 7 }
  0x52   : > { %v253_v2 = vshrl.u32 %v252_v0, 7  ;;  %v256_v4 = vand.u32 127, %v252_v0  ;;  %v249_v12 = vsub.f32 %v245_v8, %v247_v10  ;;  %v250_v15 = vsub.f32 %v246_v9, %v248_v11  ;;  %s231_s27 = scalar_lea.vmem [#allocation7], %s403_s21  ;;  %s287_s7 = scalar_lea.hbm %s869_s2, %s406_s22 }
  0x53   : > { %s289_s5 = sshll.u32 %s231_s27, 4  ;;  %s276_s8 = scalar_lea.sflag [#allocation4], %s229_s17  ;;  %s290_s5 = int_to_ptr.vmem [resolvable:$true] %s289_s5 }
  0x54   : > { %v254_v3 = vadd.s32 8, %v253_v2  ;;  %v259_v5 = vadd.s32 %v258_v1, %v253_v2  ;;  %s561_s18 = scalar_lea.vmem %s290_s5, 128  ;;  %p880_p4 = scmp.ne.s32.totalorder %s874_s25, 0 }
  0x55   : > { %p562_p2 = scmp.ne.s32.totalorder %s290_s5, %s561_s18  ;;  %s672_s20 = smov [#allocation7]  }
  0x56   : > { %v260_v6 = vadd.s32 %v258_v1, %v254_v3  ;;  %v261_v7 = vmul.u32 128, %v259_v5  ;;  %s565_s23 = sshll.u32 %s672_s20, 4  ;;  %s566_s23 = int_to_ptr.vmem [resolvable:$false] %s565_s23 }
  0x57   : > { %p563_p12 = pnand %p562_p2, %p880_p4  ;;  %s567_s30 = scalar_lea.vmem %s566_s23, 256 }
  0x58   : > { %v262_v13 = vmul.u32 128, %v260_v6  ;;  %v263_v14 = vadd.s32 %v261_v7, %v256_v4  ;;  %p568_p0 = scmp.lt.s32.totalorder %s290_s5, %s566_s23  ;;  %p569_p8 = scmp.lt.s32.totalorder %s567_s30, %s561_s18 }
  0x59   : > { %p564_p13 = pneg %p563_p12 }
  0x5a   : > { %v264_v16 = vadd.s32 %v262_v13, %v256_v4  ;;  %vm265_vm0 = vcmp.lt.s32.totalorder %v263_v14, 2048  ;;  %p570_p9 = por %p569_p8, %p568_p0 }
  0x5b   : > { %v267_v17 = vsel %vm265_vm0, %v249_v12, 0.0 }
  0x5c   : > { %vm266_vm1 = vcmp.lt.s32.totalorder %v264_v16, 2048  ;;  %v269_v18 = vmul.f32 %v267_v17, %v267_v17  ;;  %p571_p10 = pnand %p570_p9, %p564_p13 }
  0x5d   : > { %v268_v19 = vsel %vm266_vm1, %v250_v15, 0.0 }
  0x5e   : > { %v270_v20 = vmul.f32 %v268_v19, %v268_v19 }
  0x60   : > { %v272_v21 = vadd.f32 %v270_v20, %v269_v18 }
  0x62   : > { %274 = vst [vmem:[%s231_s27] sm:$0xff] %v272_v21 }
  0x63   : > { %574 = shalt.err (!%p571_p10)
}
  0x64   : > { %s575_s14 = scalar_lea.hbm %s287_s7, 128  ;;  %s579_s4 = scalar_lea.hbm %s869_s2, 256 }
  0x65   : > { %p576_p11 = scmp.ne.s32.totalorder %s287_s7, %s575_s14  ;;  %p580_p7 = scmp.lt.s32.totalorder %s287_s7, %s869_s2 }
  0x66   : > { %p581_p6 = scmp.lt.s32.totalorder %s579_s4, %s575_s14 }
  0x67   : > { %p577_p1 = pnand %p576_p11, %p880_p4 }
  0x68   : > { %p582_p5 = por %p581_p6, %p580_p7 }
  0x69   : > { %p578_p3 = pneg %p577_p1 }
  0x6b   : > { %p583_p2 = pnand %p582_p5, %p578_p3 }
  0x6d   : > { %586 = shalt.err (!%p583_p2)
}
  0x6e   : > { %415 = dma.vmem_to_hbm [thread:$0]  (%p880_p4), %s290_s5, 128, %s287_s7, %s276_s8  }
  0x6f PF: > { %s301_s21 = sand.u32 1, %s638_s9   ;;  %p881_p12 = scmp.ne.s32.totalorder %s875_s26, 0 }
  0x70   : > { %p882_p13 = scmp.ge.s32.totalorder %s666_s16, 2  ;;  %s302_s22 = scalar_lea.sflag [#allocation4], %s301_s21 }
  0x72   : > { %p425_p0 = pnand %p882_p13, %p881_p12 }
  0x74   : > { %p426_p8 = pneg %p425_p0 }
  0x76   : > { %632 = dma.done.wait (%p426_p8), %s302_s22, 128  }
  0x77   : > { %634 = vsyncadd (%p426_p8), %s302_s22, 4294967168  ;;  %s21_s16 = sadd.s32 1, %s666_s16   ;;  %s883_s9 = smov %s642_s10 }
  0x78   : > { %p18_p9 = scmp.ge.s32.totalorder %s21_s16, 4   ;;  %s884_s10 = smov %s646_s11 }
  0x79   : > { %s885_s11 = smov %s746_s24  ;;  %s886_s12 = smov %s654_s13 }
  0x7a   : > { %s857_s13 = smov 0   ;;  %s887_s14 = smov %s662_s15 }
  0x7b   : > { %s888_s15 = smov %s890_s19  ;;  %20 = sbr.rel (!%p18_p9) target bundleno = 9 (0x9), region = 90 }
  0x80   :  { %307 = vsyncpa [#allocation3], 1 }
  0x81   :  { %309 = vsyncpa [#allocation3 + $0x1], 1 }
  0x82   :  { %310 = vsyncpa [#allocation6], 1 }
  0x83   :  { %312 = vsyncpa [#allocation6 + $0x1], 1 }
  0x84   :  { %313 = vsyncpa [#allocation4], 1 }
  0x85   :  { %315 = vsyncpa [#allocation4 + $0x1], 1 }

</bundles_post_ra>
